<compile_context>
chip_gen: v7x
topology: tpu7x:2x2x1
jax: 0.10.0
libtpu: 0.0.40
codegen_flags: <defaults>
</compile_context>

<pallas_src>
import jax
import jax.numpy as jnp
from jax.experimental import pallas as pl
from jax.experimental.pallas import tpu as pltpu


_LANE = 128
_RESIDENT_WEIGHT_BYTES = 5 * 1024 * 1024   # bf16 folded weight kept VMEM-resident
_VMEM_CAP = 48 * 1024 * 1024               # safe on v7x (64 MiB/TC); fine on v5e/v6e


# ----------------------------------------------------------------------------
# Kernels
# ----------------------------------------------------------------------------
def _make_resident_kernel(apply_relu, has_residual):
    """out = act(patches_tile @ W + bias [+ residual_tile]); W fully resident."""
    def kernel(p_ref, w_ref, b_ref, *rest):
        if has_residual:
            r_ref, o_ref = rest
        else:
            (o_ref,) = rest
        out = jnp.dot(p_ref[...], w_ref[...], preferred_element_type=jnp.float32)
        out = out + b_ref[...]
        if has_residual:
            out = out + r_ref[...].astype(jnp.float32)
        if apply_relu:
            out = jnp.maximum(out, 0.0)
        o_ref[...] = out.astype(o_ref.dtype)
    return kernel


def _make_tiled_kernel(apply_relu, has_residual):
    """3-D (i, j, k) tiled fallback with f32 VMEM accumulator (bias-initialized)."""
    def kernel(p_ref, w_ref, b_ref, *rest):
        if has_residual:
            r_ref, o_ref, acc_ref = rest
        else:
            o_ref, acc_ref = rest

        k = pl.program_id(2)

        @pl.when(k == 0)
        def _init():
            acc_ref[...] = jnp.broadcast_to(b_ref[...], acc_ref.shape)

        acc_ref[...] += jnp.dot(p_ref[...], w_ref[...],
                                preferred_element_type=jnp.float32)

        @pl.when(k == pl.num_programs(2) - 1)
        def _finalize():
            out = acc_ref[...]
            if has_residual:
                out = out + r_ref[...].astype(jnp.float32)
            if apply_relu:
                out = jnp.maximum(out, 0.0)
            o_ref[...] = out.astype(o_ref.dtype)
    return kernel


# ----------------------------------------------------------------------------
# Tiling helpers
# ----------------------------------------------------------------------------
def _round_up(x, m):
    return (x + m - 1) // m * m


def _tiling(dim, max_tile):
    """(padded, tile): padded = round_up(dim, 128); tile = the largest
    128-multiple divisor of `padded` that is <= max_tile (no re-padding)."""
    padded = _round_up(dim, _LANE)
    tile = _LANE
    t = _LANE
    while t <= min(max_tile, padded):
        if padded % t == 0:
            tile = t
        t += _LANE
    return padded, tile


def _m_tiling(m, max_tm):
    padded, tile = _tiling(m, max_tm)
    # v7x shards the "parallel" M axis across 2 TensorCores: make sure there
    # are at least 2 M tiles (tile // 2 is still a multiple of 8).
    if padded // tile == 1 and tile >= 16:
        tile //= 2
    return padded, tile


# ----------------------------------------------------------------------------
# Fused matmul + BN(bias) [+ residual] [+ ReLU]
# ----------------------------------------------------------------------------
def fused_matmul_bn(patches, w_fold, bias, residual=None, relu=True,
                    out_dtype=jnp.float32, max_tm=512, max_tn=512, max_tk=512):
    """out = act(patches @ w_fold + bias [+ residual]).

    patches: (M, K)  (bf16 or f32; cast to bf16 for the MXU)
    w_fold : (K, Cout) f32 weights with the BN scale already folded in
    bias   : (Cout,) f32 folded BN bias
    residual: optional (M, Cout) (streamed as bf16, added in f32)
    Accumulation is f32; output dtype is `out_dtype`.
    """
    M, K = patches.shape
    K2, Cout = w_fold.shape
    assert K == K2

    Mp, TM = _m_tiling(M, max_tm)
    Kp, TK = _tiling(K, max_tk)
    Np, TN = _tiling(Cout, max_tn)

    p = patches if patches.dtype == jnp.bfloat16 else patches.astype(jnp.bfloat16)
    p = jnp.pad(p, ((0, Mp - M), (0, Kp - K)))
    w = jnp.pad(w_fold.astype(jnp.bfloat16), ((0, Kp - K), (0, Np - Cout)))
    b = jnp.pad(bias.reshape(1, Cout).astype(jnp.float32),
                ((0, 0), (0, Np - Cout)))

    has_res = residual is not None
    if has_res:
        r = (residual if residual.dtype == jnp.bfloat16
             else residual.astype(jnp.bfloat16))
        r = jnp.pad(r, ((0, Mp - M), (0, Np - Cout)))

    out_isz = jnp.dtype(out_dtype).itemsize
    cost = pl.CostEstimate(
        flops=2 * Mp * Np * Kp,
        transcendentals=0,
        bytes_accessed=(Mp * Kp * 2 + Kp * Np * 2 + Np * 4
                        + (Mp * Np * 2 if has_res else 0) + Mp * Np * out_isz))

    resident = (Kp * Np * 2) <= _RESIDENT_WEIGHT_BYTES

    if resident:
        # Weights + bias fully resident in VMEM; only patches (and the
        # residual/output) stream. 1-D grid over M tiles, one dot per tile.
        in_specs = [
            pl.BlockSpec((TM, Kp), lambda i: (i, 0)),
            pl.BlockSpec((Kp, Np), lambda i: (0, 0)),
            pl.BlockSpec((1, Np), lambda i: (0, 0)),
        ]
        args = [p, w, b]
        if has_res:
            in_specs.append(pl.BlockSpec((TM, Np), lambda i: (i, 0)))
            args.append(r)
        block_bytes = (TM * Kp * 2 + Kp * Np * 2 + Np * 4
                       + (TM * Np * 2 if has_res else 0) + TM * Np * out_isz)
        vmem_limit = int(min(2 * block_bytes + (4 << 20), _VMEM_CAP))

        out = pl.pallas_call(
            _make_resident_kernel(relu, has_res),
            out_shape=jax.ShapeDtypeStruct((Mp, Np), out_dtype),
            grid=(Mp // TM,),
            in_specs=in_specs,
            out_specs=pl.BlockSpec((TM, Np), lambda i: (i, 0)),
            compiler_params=pltpu.CompilerParams(
                dimension_semantics=("parallel",),
                vmem_limit_bytes=vmem_limit),
            cost_estimate=cost,
        )(*args)
    else:
        # General 3-D tiled path (not reached for BasicBlock-sized weights).
        in_specs = [
            pl.BlockSpec((TM, TK), lambda i, j, k: (i, k)),
            pl.BlockSpec((TK, TN), lambda i, j, k: (k, j)),
            pl.BlockSpec((1, TN), lambda i, j, k: (0, j)),
        ]
        args = [p, w, b]
        if has_res:
            in_specs.append(pl.BlockSpec((TM, TN), lambda i, j, k: (i, j)))
            args.append(r)
        block_bytes = (TM * TK * 2 + TK * TN * 2 + TN * 4
                       + (TM * TN * 2 if has_res else 0) + TM * TN * out_isz)
        vmem_limit = int(min(2 * block_bytes + TM * TN * 4 + (4 << 20), _VMEM_CAP))

        out = pl.pallas_call(
            _make_tiled_kernel(relu, has_res),
            out_shape=jax.ShapeDtypeStruct((Mp, Np), out_dtype),
            grid=(Mp // TM, Np // TN, Kp // TK),
            in_specs=in_specs,
            out_specs=pl.BlockSpec((TM, TN), lambda i, j, k: (i, j)),
            scratch_shapes=[pltpu.VMEM((TM, TN), jnp.float32)],
            compiler_params=pltpu.CompilerParams(
                dimension_semantics=("parallel", "parallel", "arbitrary"),
                vmem_limit_bytes=vmem_limit),
            cost_estimate=cost,
        )(*args)

    return out[:M, :Cout]


# ----------------------------------------------------------------------------
# Glue: im2col, parameter init, BN folding
# ----------------------------------------------------------------------------
def extract_patches_3x3(x_nhwc, stride):
    """im2col for a 3x3 conv, padding=1. Produces bf16 patches directly so the
    (M, 9*C) matrix is written to HBM once, in bf16.
    Returns ((N*Ho*Wo, 9*C) bf16, (N, Ho, Wo))."""
    N, H, W, C = x_nhwc.shape
    Ho = (H + 2 - 3) // stride + 1
    Wo = (W + 2 - 3) // stride + 1
    xb = x_nhwc.astype(jnp.bfloat16)
    xp = jnp.pad(xb, ((0, 0), (1, 1), (1, 1), (0, 0)))
    cols = []
    for di in range(3):
        for dj in range(3):
            cols.append(xp[:, di:di + (Ho - 1) * stride + 1:stride,
                            dj:dj + (Wo - 1) * stride + 1:stride, :])
    patches = jnp.concatenate(cols, axis=-1)          # (N, Ho, Wo, 9*C) bf16
    return patches.reshape(N * Ho * Wo, 9 * C), (N, Ho, Wo)


def _conv_w(key, cout, cin, kh, kw):
    fan_in = cin * kh * kw
    return (jax.random.normal(key, (cout, cin, kh, kw), jnp.float32)
            / jnp.sqrt(float(fan_in)))


def _bn_params(key, c):
    k1, k2, k3, k4 = jax.random.split(key, 4)
    gamma = 1.0 + 0.1 * jax.random.normal(k1, (c,), jnp.float32)
    beta = 0.1 * jax.random.normal(k2, (c,), jnp.float32)
    mean = 0.1 * jax.random.normal(k3, (c,), jnp.float32)
    var = 0.5 + jnp.abs(jax.random.normal(k4, (c,), jnp.float32))
    return (gamma, beta, mean, var)


def init_basic_block_params(key, in_ch, out_ch, stride):
    ks = jax.random.split(key, 6)
    params = {
        "conv1": _conv_w(ks[0], out_ch, in_ch, 3, 3),
        "bn1": _bn_params(ks[1], out_ch),
        "conv2": _conv_w(ks[2], out_ch, out_ch, 3, 3),
        "bn2": _bn_params(ks[3], out_ch),
    }
    if stride != 1 or in_ch != out_ch:
        params["conv_sc"] = _conv_w(ks[4], out_ch, in_ch, 1, 1)
        params["bn_sc"] = _bn_params(ks[5], out_ch)
    return params


def bn_fold(bn, eps=1e-5):
    gamma, beta, mean, var = bn
    scale = gamma / jnp.sqrt(var + eps)
    bias = beta - mean * scale
    return scale, bias


# ----------------------------------------------------------------------------
# BasicBlock forward (Pallas-backed)
# ----------------------------------------------------------------------------
def basic_block_forward_nhwc(params, x, stride):
    x = x.astype(jnp.float32)
    N, H, W, Cin = x.shape
    Cout = params["conv1"].shape[0]

    # conv1 (3x3, stride, pad=1) + bn1 + relu  -> bf16 intermediate
    p1, (N, Ho, Wo) = extract_patches_3x3(x, stride)
    s1, b1 = bn_fold(params["bn1"])
    w1 = jnp.transpose(params["conv1"], (2, 3, 1, 0)).reshape(9 * Cin, Cout)
    out1 = fused_matmul_bn(p1, w1 * s1[None, :], b1, relu=True,
                           out_dtype=jnp.bfloat16)
    out1_nhwc = out1.reshape(N, Ho, Wo, Cout)

    # shortcut: identity, or 1x1 conv (stride) + bn  -> bf16 residual
    if "conv_sc" in params:
        xs = x[:, 0:(Ho - 1) * stride + 1:stride,
                  0:(Wo - 1) * stride + 1:stride, :].reshape(N * Ho * Wo, Cin)
        ssc, bsc = bn_fold(params["bn_sc"])
        wsc = jnp.transpose(params["conv_sc"], (2, 3, 1, 0)).reshape(Cin, Cout)
        shortcut = fused_matmul_bn(xs.astype(jnp.bfloat16), wsc * ssc[None, :],
                                   bsc, relu=False, out_dtype=jnp.bfloat16)
    else:
        shortcut = x.reshape(N * Ho * Wo, Cin).astype(jnp.bfloat16)

    # conv2 (3x3, stride=1, pad=1) + bn2 + residual add + relu (fused epilogue)
    p2, _ = extract_patches_3x3(out1_nhwc, 1)
    s2, b2 = bn_fold(params["bn2"])
    w2 = jnp.transpose(params["conv2"], (2, 3, 1, 0)).reshape(9 * Cout, Cout)
    out2 = fused_matmul_bn(p2, w2 * s2[None, :], b2, residual=shortcut,
                           relu=True, out_dtype=jnp.float32)
    return out2.reshape(N, Ho, Wo, Cout)


def basic_block_forward(params, x_nchw, stride):
    # PyTorch-compatible NCHW boundary; hot path runs in NHWC.
    x = jnp.transpose(x_nchw, (0, 2, 3, 1))
    out = basic_block_forward_nhwc(params, x, stride)
    return jnp.transpose(out, (0, 3, 1, 2))


# ----------------------------------------------------------------------------
# Pure-JAX reference (for correctness check)
# ----------------------------------------------------------------------------
def ref_forward(params, x_nchw, stride):
    def conv(x, w, s, pad):
        return jax.lax.conv_general_dilated(
            x, w, (s, s), [(pad, pad), (pad, pad)],
            dimension_numbers=("NCHW", "OIHW", "NCHW"))

    def bn(x, p, eps=1e-5):
        gamma, beta, mean, var = p
        g = gamma.reshape(1, -1, 1, 1)
        b = beta.reshape(1, -1, 1, 1)
        m = mean.reshape(1, -1, 1, 1)
        v = var.reshape(1, -1, 1, 1)
        return (x - m) / jnp.sqrt(v + eps) * g + b

    out = jax.nn.relu(bn(conv(x_nchw, params["conv1"], stride, 1), params["bn1"]))
    out = bn(conv(out, params["conv2"], 1, 1), params["bn2"])
    if "conv_sc" in params:
        sc = bn(conv(x_nchw, params["conv_sc"], stride, 0), params["bn_sc"])
    else:
        sc = x_nchw
    return jax.nn.relu(out + sc)


def _check(y, r, name):
    err = float(jnp.max(jnp.abs(y - r)))
    # bf16 matmul inputs/intermediates (f32 accumulate): bf16-level tolerance.
    tol = 3e-2 + 3e-2 * float(jnp.max(jnp.abs(r)))
    assert err < tol, f"{name}: max abs err {err} exceeds tol {tol}"


if __name__ == "__main__":
    key = jax.random.PRNGKey(0)
    kx, kp1, kp2 = jax.random.split(key, 3)
    x = jax.random.normal(kx, (2, 4, 16, 16), jnp.float32)

    fwd = jax.jit(basic_block_forward, static_argnames="stride")

    # Case 1: projection shortcut (stride=2, 4 -> 8 channels)
    params1 = init_basic_block_params(kp1, 4, 8, 2)
    y1 = jax.block_until_ready(fwd(params1, x, stride=2))
    r1 = ref_forward(params1, x, 2)
    assert y1.shape == (2, 8, 8, 8), y1.shape
    _check(y1, r1, "projection-shortcut")

    # Case 2: identity shortcut (stride=1, 4 -> 4 channels)
    params2 = init_basic_block_params(kp2, 4, 4, 1)
    y2 = jax.block_until_ready(fwd(params2, x, stride=1))
    r2 = ref_forward(params2, x, 1)
    assert y2.shape == (2, 4, 16, 16), y2.shape
    _check(y2, r2, "identity-shortcut")

    print("KERNEL_OK")
</pallas_src>

<mosaic_0001>
module attributes {stable_mosaic.version = 11 : i64} {
  func.func @kernel(%arg0: i32, %arg1: memref<64x128xbf16, #tpu.memory_space<vmem>>, %arg2: memref<128x128xbf16, #tpu.memory_space<vmem>>, %arg3: memref<1x128xf32, #tpu.memory_space<vmem>>, %arg4: memref<64x128xbf16, #tpu.memory_space<vmem>>) attributes {dimension_semantics = [#tpu.dimension_semantics<parallel>], iteration_bounds = array<i64: 2>, scalar_prefetch = 0 : i64, scratch_operands = 0 : i64, tpu.core_type = #tpu.core_type<tc>, window_params = [{transform_indices = @transform_0, window_bounds = array<i64: 64, 128>}, {pipeline_mode = #tpu.pipeline_mode<synchronous>, transform_indices = @transform_1, window_bounds = array<i64: 128, 128>}, {pipeline_mode = #tpu.pipeline_mode<synchronous>, transform_indices = @transform_2, window_bounds = array<i64: 1, 128>}, {transform_indices = @transform_3, window_bounds = array<i64: 64, 128>}]} {
    %c0 = arith.constant 0 : index
    %c0_0 = arith.constant 0 : index
    %0 = vector.load %arg1[%c0, %c0_0] : memref<64x128xbf16, #tpu.memory_space<vmem>>, vector<64x128xbf16>
    %c0_1 = arith.constant 0 : index
    %c0_2 = arith.constant 0 : index
    %1 = vector.load %arg2[%c0_1, %c0_2] : memref<128x128xbf16, #tpu.memory_space<vmem>>, vector<128x128xbf16>
    %cst = arith.constant dense<0.000000e+00> : vector<64x128xf32>
    %2 = tpu.matmul %0, %1, %cst {dimension_numbers = #tpu.dot_dimension_numbers<[1], [0], [0], [1], [0, 0, 1, 1], [], []>} : vector<64x128xbf16>, vector<128x128xbf16>, vector<64x128xf32> -> vector<64x128xf32>
    %c0_3 = arith.constant 0 : index
    %c0_4 = arith.constant 0 : index
    %3 = vector.load %arg3[%c0_3, %c0_4] : memref<1x128xf32, #tpu.memory_space<vmem>>, vector<1x128xf32>
    %4 = vector.broadcast %3 : vector<1x128xf32> to vector<64x128xf32>
    %5 = arith.addf %2, %4 : vector<64x128xf32>
    %cst_5 = arith.constant 0.000000e+00 : f32
    %6 = vector.broadcast %cst_5 : f32 to vector<64x128xf32>
    %7 = arith.maximumf %5, %6 : vector<64x128xf32>
    %8 = arith.truncf %7 : vector<64x128xf32> to vector<64x128xbf16>
    %c0_6 = arith.constant 0 : index
    %c0_7 = arith.constant 0 : index
    %9 = vector.load %arg4[%c0_6, %c0_7] : memref<64x128xbf16, #tpu.memory_space<vmem>>, vector<64x128xbf16>
    tpu.vector_store %arg4[%c0_6, %c0_7], %8 {strides = array<i32>} : memref<64x128xbf16, #tpu.memory_space<vmem>>, vector<64x128xbf16>,
    return
  }
  func.func @transform_0(%arg0: i32) -> (i32, i32) {
    %c0_i32 = arith.constant 0 : i32
    %c0_i32_0 = arith.constant 0 : i32
    return %arg0, %c0_i32 : i32, i32
  }
  func.func @transform_1(%arg0: i32) -> (i32, i32) {
    %c0_i32 = arith.constant 0 : i32
    %c0_i32_0 = arith.constant 0 : i32
    %c0_i32_1 = arith.constant 0 : i32
    return %c0_i32, %c0_i32_0 : i32, i32
  }
  func.func @transform_2(%arg0: i32) -> (i32, i32) {
    %c0_i32 = arith.constant 0 : i32
    %c0_i32_0 = arith.constant 0 : i32
    %c0_i32_1 = arith.constant 0 : i32
    return %c0_i32, %c0_i32_0 : i32, i32
  }
  func.func @transform_3(%arg0: i32) -> (i32, i32) {
    %c0_i32 = arith.constant 0 : i32
    %c0_i32_0 = arith.constant 0 : i32
    return %arg0, %c0_i32 : i32, i32
  }
}

module attributes {stable_mosaic.version = 11 : i64} {
  func.func @kernel(%arg0: i32, %arg1: memref<64x128xbf16, #tpu.memory_space<vmem>>, %arg2: memref<128x128xbf16, #tpu.memory_space<vmem>>, %arg3: memref<1x128xf32, #tpu.memory_space<vmem>>, %arg4: memref<64x128xbf16, #tpu.memory_space<vmem>>) attributes {dimension_semantics = [#tpu.dimension_semantics<parallel>], iteration_bounds = array<i64: 2>, scalar_prefetch = 0 : i64, scratch_operands = 0 : i64, tpu.core_type = #tpu.core_type<tc>, window_params = [{transform_indices = @transform_0, window_bounds = array<i64: 64, 128>}, {pipeline_mode = #tpu.pipeline_mode<synchronous>, transform_indices = @transform_1, window_bounds = array<i64: 128, 128>}, {pipeline_mode = #tpu.pipeline_mode<synchronous>, transform_indices = @transform_2, window_bounds = array<i64: 1, 128>}, {transform_indices = @transform_3, window_bounds = array<i64: 64, 128>}]} {
    %c0 = arith.constant 0 : index
    %c0_0 = arith.constant 0 : index
    %0 = vector.load %arg1[%c0, %c0_0] : memref<64x128xbf16, #tpu.memory_space<vmem>>, vector<64x128xbf16>
    %c0_1 = arith.constant 0 : index
    %c0_2 = arith.constant 0 : index
    %1 = vector.load %arg2[%c0_1, %c0_2] : memref<128x128xbf16, #tpu.memory_space<vmem>>, vector<128x128xbf16>
    %cst = arith.constant dense<0.000000e+00> : vector<64x128xf32>
    %2 = tpu.matmul %0, %1, %cst {dimension_numbers = #tpu.dot_dimension_numbers<[1], [0], [0], [1], [0, 0, 1, 1], [], []>} : vector<64x128xbf16>, vector<128x128xbf16>, vector<64x128xf32> -> vector<64x128xf32>
    %c0_3 = arith.constant 0 : index
    %c0_4 = arith.constant 0 : index
    %3 = vector.load %arg3[%c0_3, %c0_4] : memref<1x128xf32, #tpu.memory_space<vmem>>, vector<1x128xf32>
    %4 = vector.broadcast %3 : vector<1x128xf32> to vector<64x128xf32>
    %5 = arith.addf %2, %4 : vector<64x128xf32>
    %6 = arith.truncf %5 : vector<64x128xf32> to vector<64x128xbf16>
    %c0_5 = arith.constant 0 : index
    %c0_6 = arith.constant 0 : index
    %7 = vector.load %arg4[%c0_5, %c0_6] : memref<64x128xbf16, #tpu.memory_space<vmem>>, vector<64x128xbf16>
    tpu.vector_store %arg4[%c0_5, %c0_6], %6 {strides = array<i32>} : memref<64x128xbf16, #tpu.memory_space<vmem>>, vector<64x128xbf16>,
    return
  }
  func.func @transform_0(%arg0: i32) -> (i32, i32) {
    %c0_i32 = arith.constant 0 : i32
    %c0_i32_0 = arith.constant 0 : i32
    return %arg0, %c0_i32 : i32, i32
  }
  func.func @transform_1(%arg0: i32) -> (i32, i32) {
    %c0_i32 = arith.constant 0 : i32
    %c0_i32_0 = arith.constant 0 : i32
    %c0_i32_1 = arith.constant 0 : i32
    return %c0_i32, %c0_i32_0 : i32, i32
  }
  func.func @transform_2(%arg0: i32) -> (i32, i32) {
    %c0_i32 = arith.constant 0 : i32
    %c0_i32_0 = arith.constant 0 : i32
    %c0_i32_1 = arith.constant 0 : i32
    return %c0_i32, %c0_i32_0 : i32, i32
  }
  func.func @transform_3(%arg0: i32) -> (i32, i32) {
    %c0_i32 = arith.constant 0 : i32
    %c0_i32_0 = arith.constant 0 : i32
    return %arg0, %c0_i32 : i32, i32
  }
}

module attributes {stable_mosaic.version = 11 : i64} {
  func.func @kernel(%arg0: i32, %arg1: memref<64x128xbf16, #tpu.memory_space<vmem>>, %arg2: memref<128x128xbf16, #tpu.memory_space<vmem>>, %arg3: memref<1x128xf32, #tpu.memory_space<vmem>>, %arg4: memref<64x128xbf16, #tpu.memory_space<vmem>>, %arg5: memref<64x128xf32, #tpu.memory_space<vmem>>) attributes {dimension_semantics = [#tpu.dimension_semantics<parallel>], iteration_bounds = array<i64: 2>, scalar_prefetch = 0 : i64, scratch_operands = 0 : i64, tpu.core_type = #tpu.core_type<tc>, window_params = [{transform_indices = @transform_0, window_bounds = array<i64: 64, 128>}, {pipeline_mode = #tpu.pipeline_mode<synchronous>, transform_indices = @transform_1, window_bounds = array<i64: 128, 128>}, {pipeline_mode = #tpu.pipeline_mode<synchronous>, transform_indices = @transform_2, window_bounds = array<i64: 1, 128>}, {transform_indices = @transform_3, window_bounds = array<i64: 64, 128>}, {transform_indices = @transform_4, window_bounds = array<i64: 64, 128>}]} {
    %c0 = arith.constant 0 : index
    %c0_0 = arith.constant 0 : index
    %0 = vector.load %arg1[%c0, %c0_0] : memref<64x128xbf16, #tpu.memory_space<vmem>>, vector<64x128xbf16>
    %c0_1 = arith.constant 0 : index
    %c0_2 = arith.constant 0 : index
    %1 = vector.load %arg2[%c0_1, %c0_2] : memref<128x128xbf16, #tpu.memory_space<vmem>>, vector<128x128xbf16>
    %cst = arith.constant dense<0.000000e+00> : vector<64x128xf32>
    %2 = tpu.matmul %0, %1, %cst {dimension_numbers = #tpu.dot_dimension_numbers<[1], [0], [0], [1], [0, 0, 1, 1], [], []>} : vector<64x128xbf16>, vector<128x128xbf16>, vector<64x128xf32> -> vector<64x128xf32>
    %c0_3 = arith.constant 0 : index
    %c0_4 = arith.constant 0 : index
    %3 = vector.load %arg3[%c0_3, %c0_4] : memref<1x128xf32, #tpu.memory_space<vmem>>, vector<1x128xf32>
    %4 = vector.broadcast %3 : vector<1x128xf32> to vector<64x128xf32>
    %5 = arith.addf %2, %4 : vector<64x128xf32>
    %c0_5 = arith.constant 0 : index
    %c0_6 = arith.constant 0 : index
    %6 = vector.load %arg4[%c0_5, %c0_6] : memref<64x128xbf16, #tpu.memory_space<vmem>>, vector<64x128xbf16>
    %7 = arith.extf %6 : vector<64x128xbf16> to vector<64x128xf32>
    %8 = arith.addf %5, %7 : vector<64x128xf32>
    %cst_7 = arith.constant 0.000000e+00 : f32
    %9 = vector.broadcast %cst_7 : f32 to vector<64x128xf32>
    %10 = arith.maximumf %8, %9 : vector<64x128xf32>
    %c0_8 = arith.constant 0 : index
    %c0_9 = arith.constant 0 : index
    %11 = vector.load %arg5[%c0_8, %c0_9] : memref<64x128xf32, #tpu.memory_space<vmem>>, vector<64x128xf32>
    tpu.vector_store %arg5[%c0_8, %c0_9], %10 {strides = array<i32>} : memref<64x128xf32, #tpu.memory_space<vmem>>, vector<64x128xf32>,
    return
  }
  func.func @transform_0(%arg0: i32) -> (i32, i32) {
    %c0_i32 = arith.constant 0 : i32
    %c0_i32_0 = arith.constant 0 : i32
    return %arg0, %c0_i32 : i32, i32
  }
  func.func @transform_1(%arg0: i32) -> (i32, i32) {
    %c0_i32 = arith.constant 0 : i32
    %c0_i32_0 = arith.constant 0 : i32
    %c0_i32_1 = arith.constant 0 : i32
    return %c0_i32, %c0_i32_0 : i32, i32
  }
  func.func @transform_2(%arg0: i32) -> (i32, i32) {
    %c0_i32 = arith.constant 0 : i32
    %c0_i32_0 = arith.constant 0 : i32
    %c0_i32_1 = arith.constant 0 : i32
    return %c0_i32, %c0_i32_0 : i32, i32
  }
  func.func @transform_3(%arg0: i32) -> (i32, i32) {
    %c0_i32 = arith.constant 0 : i32
    %c0_i32_0 = arith.constant 0 : i32
    return %arg0, %c0_i32 : i32, i32
  }
  func.func @transform_4(%arg0: i32) -> (i32, i32) {
    %c0_i32 = arith.constant 0 : i32
    %c0_i32_0 = arith.constant 0 : i32
    return %arg0, %c0_i32 : i32, i32
  }
}

</mosaic_0001>

<bundles_post_ra>
// kernel: basic_block_forward.3
= control target key start
LH: loop header
LB: loop body
LE: loop exit
PB: predicated region body
PF: predicated region fallthrough
CT: control target
= control target key end

     0   :  { %s610_s12 = smov 0   ;;  %s667_s0 = inlined_call_operand.vmem [shape: bf16[128,128], index: 0, kind: input, shape index: {}]   ;;  %s668_s1 = inlined_call_operand.vmem [shape: bf16[128,128], index: 1, kind: input, shape index: {}]   ;;  %s669_s2 = inlined_call_operand.vmem [shape: f32[1,128], index: 2, kind: input, shape index: {}]   ;;  %s670_s3 = inlined_call_operand.vmem [shape: bf16[128,128], index: 3, kind: output, shape index: {}]  }
   0x1 LB: > { %s447_s13 = sadd.s32 4294967295, %s588_s12   ;;  %p451_p0 = scmp.ge.s32.totalorder %s588_s12, 1  ;;  %s588_s12 = sphi %s610_s12, %s13_s12  }
   0x2   : > { %p138_p1 = scmp.lt.s32.totalorder %s588_s12, 3 }
   0x4   : > { %p139_p2 = pnand %p451_p0, %p138_p1 }
   0x5   : > { %v570_v0 = vld [vmem:[%s668_s1] sm:$0xff] (!%p139_p2)   ;;  %s452_s16 = sshll.u32 (!%p139_p2), %s447_s13, 3  ;;  %v571_v1 = vld [vmem:[%s668_s1 + $0x8] sm:$0xff] (!%p139_p2)   ;;  %v572_v2 = vld [vmem:[%s668_s1 + $0x10] sm:$0xff] (!%p139_p2)  }
   0x6   : > { %142 = sbr.rel (%p139_p2) target bundleno = 260 (0x104), region = 32  ;;  %p163_p3 = scmp.lt.s32.totalorder (!%p139_p2), %s452_s16, 15  ;;  %522 = vmatprep.subr.bf16.mxu0 (!%p139_p2), %v570_v0  ;;  %546 = vmatprep.subr.bf16.mxu1 (!%p139_p2), %v570_v0  ;;  %v573_v3 = vld [vmem:[%s668_s1 + $0x18] sm:$0xff] (!%p139_p2)   ;;  %v574_v6 = vld [vmem:[%s668_s1 + $0x20] sm:$0xff] (!%p139_p2)   ;;  %v575_v7 = vld [vmem:[%s668_s1 + $0x28] sm:$0xff] (!%p139_p2)  }
   0x7   : > { %523 = vmatpush3.bf16.msra.mxu0 (!%p139_p2), %v570_v0  ;;  %554 = vmatpush3.bf16.msra.mxu1 (!%p139_p2), %v570_v0  ;;  %v576_v8 = vld [vmem:[%s668_s1 + $0x30] sm:$0xff] (!%p139_p2)   ;;  %v577_v9 = vld [vmem:[%s668_s1 + $0x38] sm:$0xff] (!%p139_p2)   ;;  %v456_v12 = vld [vmem:[%s669_s2] ss:$0 sm:$0xff] (!%p139_p2) }
   0x8   : > { %524 = vmatprep.subr.bf16.mxu0 (!%p139_p2), %v571_v1  ;;  %547 = vmatprep.subr.bf16.mxu1 (!%p139_p2), %v571_v1 }
   0xb   : > { %525 = vmatpush3.bf16.msra.mxu0 (!%p139_p2), %v571_v1  ;;  %555 = vmatpush3.bf16.msra.mxu1 (!%p139_p2), %v571_v1 }
   0xc   : > { %526 = vmatprep.subr.bf16.mxu0 (!%p139_p2), %v572_v2  ;;  %548 = vmatprep.subr.bf16.mxu1 (!%p139_p2), %v572_v2 }
   0xd   : > { %s672_s16 = smov (!%p163_p3, %s452_s16), 15 }
   0xe   : > { %s453_s21 = sshll.u32 %s672_s16, 2 }
   0xf   : > { %s635_s24 = scalar_lea.vmem %s667_s0, %s453_s21  ;;  %527 = vmatpush3.bf16.msra.mxu0 %v572_v2  ;;  %556 = vmatpush3.bf16.msra.mxu1 %v572_v2  ;;  %s172_s13 = scalar_lea.vmem %s670_s3, %s453_s21 }
  0x10   : > { %v578_v4 = vld [vmem:[%s635_s24] sm:$0xff]   ;;  %v579_v5 = vld [vmem:[%s635_s24 + $0x10] sm:$0xff]   ;;  %528 = vmatprep.subr.bf16.mxu0 %v573_v3  ;;  %549 = vmatprep.subr.bf16.mxu1 %v573_v3  ;;  %v580_v10 = vld [vmem:[%s635_s24 + $0x8] sm:$0xff]  }
  0x11   : > { %538 = vmatprep.mubr.bf16.mxu0 %v578_v4  ;;  %542 = vmatprep.mubr.bf16.mxu1 %v579_v5  ;;  %v581_v11 = vld [vmem:[%s635_s24 + $0x18] sm:$0xff]  }
  0x13   : > { %529 = vmatpush3.bf16.msra.mxu0 %v573_v3  ;;  %557 = vmatpush3.bf16.msra.mxu1 %v573_v3 }
  0x14   : > { %530 = vmatprep.subr.bf16.mxu0 %v574_v6  ;;  %550 = vmatprep.subr.bf16.mxu1 %v574_v6 }
  0x17   : > { %531 = vmatpush3.bf16.msra.mxu0 %v574_v6  ;;  %558 = vmatpush3.bf16.msra.mxu1 %v574_v6 }
  0x18   : > { %532 = vmatprep.subr.bf16.mxu0 %v575_v7  ;;  %551 = vmatprep.subr.bf16.mxu1 %v575_v7 }
  0x1b   : > { %533 = vmatpush3.bf16.msra.mxu0 %v575_v7  ;;  %559 = vmatpush3.bf16.msra.mxu1 %v575_v7 }
  0x1c   : > { %534 = vmatprep.subr.bf16.mxu0 %v576_v8  ;;  %552 = vmatprep.subr.bf16.mxu1 %v576_v8 }
  0x1f   : > { %535 = vmatpush3.bf16.msra.mxu0 %v576_v8  ;;  %560 = vmatpush3.bf16.msra.mxu1 %v576_v8 }
  0x20   : > { %536 = vmatprep.subr.bf16.mxu0 %v577_v9  ;;  %553 = vmatprep.subr.bf16.mxu1 %v577_v9 }
  0x23   : > { %537 = vmatpush3.bf16.msra.mxu0 %v577_v9  ;;  %561 = vmatpush3.bf16.msra.mxu1 %v577_v9 }
  0x26   : > { %539 = vmatmul.mubr.bf16.vlgmr.msra.gmra.mrb[0].mxu0 %v580_v10  ;;  %543 = vmatmul.mubr.bf16.vlgmr.msra.gmra.mrb[0].mxu1 %v581_v11 }
  0xf9   : > { %v540_v13 = vpop.f32.mrb[0].mxu0  ;;  %v544_v14 = vpop.f32.mrb[0].mxu1 }
  0xfa   : > { %v321_v15 = vadd.f32 %v540_v13, %v456_v12  ;;  %v337_v16 = vadd.f32 %v544_v14, %v456_v12  ;;  %v312_v17 = vpop.f32.mrb[1].mxu0  ;;  %v328_v18 = vpop.f32.mrb[1].mxu1 }
  0xfb   : > { %v313_v19 = vadd.f32 %v456_v12, %v312_v17  ;;  %v329_v20 = vadd.f32 %v456_v12, %v328_v18  ;;  %v541_v21 = vpop.f32.mrb[2].mxu0  ;;  %v545_v22 = vpop.f32.mrb[2].mxu1 }
  0xfc   : > { %v324_v23 = vadd.f32 %v541_v21, %v456_v12  ;;  %v340_v24 = vadd.f32 %v545_v22, %v456_v12  ;;  %v315_v25 = vpop.f32.mrb[3].mxu0  ;;  %v331_v26 = vpop.f32.mrb[3].mxu1  ;;  %v345_v29 = vmax.f32 %v321_v15, 0.0  ;;  %v349_v30 = vmax.f32 %v337_v16, 0.0 }
  0xfd   : > { %v316_v27 = vadd.f32 %v456_v12, %v315_v25  ;;  %v332_v28 = vadd.f32 %v456_v12, %v331_v26  ;;  %v343_v33 = vmax.f32 %v313_v19, 0.0  ;;  %v347_v34 = vmax.f32 %v329_v20, 0.0 }
  0xfe   : > { %v346_v31 = vmax.f32 %v324_v23, 0.0  ;;  %v350_v32 = vmax.f32 %v340_v24, 0.0 }
  0xff   : > { %v344_v35 = vmax.f32 %v316_v27, 0.0  ;;  %v348_v36 = vmax.f32 %v332_v28, 0.0 }
 0x100   : > { %v495_v37 = vpack.c.bf16 %v346_v31, %v345_v29  ;;  %v505_v38 = vpack.c.bf16 %v350_v32, %v349_v30 }
 0x101   : > { %v490_v39 = vpack.c.bf16 %v344_v35, %v343_v33  ;;  %v500_v40 = vpack.c.bf16 %v348_v36, %v347_v34 }
 0x102   : > { %507 = vst [vmem:[%s172_s13 + $0x8] sm:$0xff] %v495_v37   ;;  %509 = vst [vmem:[%s172_s13 + $0x18] sm:$0xff] %v505_v38  }
 0x103   : > { %491 = vst [vmem:[%s172_s13] sm:$0xff] %v490_v39   ;;  %508 = vst [vmem:[%s172_s13 + $0x10] sm:$0xff] %v500_v40  }
 0x104 PF: > { %s13_s12 = sadd.s32 1, %s588_s12  }
 0x105   : > { %p10_p4 = scmp.ge.s32.totalorder %s13_s12, 4  }
 0x107   :  { %12 = sbr.rel (!%p10_p4) target bundleno = 1 (0x1), region = 62 }

// kernel: basic_block_forward.4
= control target key start
LH: loop header
LB: loop body
LE: loop exit
PB: predicated region body
PF: predicated region fallthrough
CT: control target
= control target key end

     0   :  { %s602_s12 = smov 0   ;;  %s659_s0 = inlined_call_operand.vmem [shape: bf16[128,128], index: 0, kind: input, shape index: {}]   ;;  %s660_s1 = inlined_call_operand.vmem [shape: bf16[128,128], index: 1, kind: input, shape index: {}]   ;;  %s661_s2 = inlined_call_operand.vmem [shape: f32[1,128], index: 2, kind: input, shape index: {}]   ;;  %s662_s3 = inlined_call_operand.vmem [shape: bf16[128,128], index: 3, kind: output, shape index: {}]  }
   0x1 LB: > { %s439_s13 = sadd.s32 4294967295, %s580_s12   ;;  %p443_p0 = scmp.ge.s32.totalorder %s580_s12, 1  ;;  %s580_s12 = sphi %s602_s12, %s13_s12  }
   0x2   : > { %p138_p1 = scmp.lt.s32.totalorder %s580_s12, 3 }
   0x4   : > { %p139_p2 = pnand %p443_p0, %p138_p1 }
   0x5   : > { %v562_v0 = vld [vmem:[%s660_s1] sm:$0xff] (!%p139_p2)   ;;  %s444_s16 = sshll.u32 (!%p139_p2), %s439_s13, 3  ;;  %v563_v1 = vld [vmem:[%s660_s1 + $0x8] sm:$0xff] (!%p139_p2)   ;;  %v564_v2 = vld [vmem:[%s660_s1 + $0x10] sm:$0xff] (!%p139_p2)  }
   0x6   : > { %142 = sbr.rel (%p139_p2) target bundleno = 258 (0x102), region = 32  ;;  %p163_p3 = scmp.lt.s32.totalorder (!%p139_p2), %s444_s16, 15  ;;  %514 = vmatprep.subr.bf16.mxu0 (!%p139_p2), %v562_v0  ;;  %538 = vmatprep.subr.bf16.mxu1 (!%p139_p2), %v562_v0  ;;  %v565_v3 = vld [vmem:[%s660_s1 + $0x18] sm:$0xff] (!%p139_p2)   ;;  %v566_v6 = vld [vmem:[%s660_s1 + $0x20] sm:$0xff] (!%p139_p2)   ;;  %v567_v7 = vld [vmem:[%s660_s1 + $0x28] sm:$0xff] (!%p139_p2)  }
   0x7   : > { %515 = vmatpush3.bf16.msra.mxu0 (!%p139_p2), %v562_v0  ;;  %546 = vmatpush3.bf16.msra.mxu1 (!%p139_p2), %v562_v0  ;;  %v568_v8 = vld [vmem:[%s660_s1 + $0x30] sm:$0xff] (!%p139_p2)   ;;  %v569_v9 = vld [vmem:[%s660_s1 + $0x38] sm:$0xff] (!%p139_p2)   ;;  %v448_v13 = vld [vmem:[%s661_s2] ss:$0 sm:$0xff] (!%p139_p2) }
   0x8   : > { %516 = vmatprep.subr.bf16.mxu0 (!%p139_p2), %v563_v1  ;;  %539 = vmatprep.subr.bf16.mxu1 (!%p139_p2), %v563_v1 }
   0xb   : > { %517 = vmatpush3.bf16.msra.mxu0 (!%p139_p2), %v563_v1  ;;  %547 = vmatpush3.bf16.msra.mxu1 (!%p139_p2), %v563_v1 }
   0xc   : > { %518 = vmatprep.subr.bf16.mxu0 (!%p139_p2), %v564_v2  ;;  %540 = vmatprep.subr.bf16.mxu1 (!%p139_p2), %v564_v2 }
   0xd   : > { %s664_s16 = smov (!%p163_p3, %s444_s16), 15 }
   0xe   : > { %s445_s21 = sshll.u32 %s664_s16, 2 }
   0xf   : > { %s627_s24 = scalar_lea.vmem %s659_s0, %s445_s21  ;;  %519 = vmatpush3.bf16.msra.mxu0 %v564_v2  ;;  %548 = vmatpush3.bf16.msra.mxu1 %v564_v2  ;;  %s172_s13 = scalar_lea.vmem %s662_s3, %s445_s21 }
  0x10   : > { %v570_v4 = vld [vmem:[%s627_s24] sm:$0xff]   ;;  %v571_v5 = vld [vmem:[%s627_s24 + $0x10] sm:$0xff]   ;;  %520 = vmatprep.subr.bf16.mxu0 %v565_v3  ;;  %541 = vmatprep.subr.bf16.mxu1 %v565_v3  ;;  %v572_v10 = vld [vmem:[%s627_s24 + $0x8] sm:$0xff]  }
  0x11   : > { %530 = vmatprep.mubr.bf16.mxu0 %v570_v4  ;;  %534 = vmatprep.mubr.bf16.mxu1 %v571_v5  ;;  %v573_v11 = vld [vmem:[%s627_s24 + $0x18] sm:$0xff]  }
  0x13   : > { %521 = vmatpush3.bf16.msra.mxu0 %v565_v3  ;;  %549 = vmatpush3.bf16.msra.mxu1 %v565_v3 }
  0x14   : > { %522 = vmatprep.subr.bf16.mxu0 %v566_v6  ;;  %542 = vmatprep.subr.bf16.mxu1 %v566_v6 }
  0x17   : > { %523 = vmatpush3.bf16.msra.mxu0 %v566_v6  ;;  %550 = vmatpush3.bf16.msra.mxu1 %v566_v6 }
  0x18   : > { %524 = vmatprep.subr.bf16.mxu0 %v567_v7  ;;  %543 = vmatprep.subr.bf16.mxu1 %v567_v7 }
  0x1b   : > { %525 = vmatpush3.bf16.msra.mxu0 %v567_v7  ;;  %551 = vmatpush3.bf16.msra.mxu1 %v567_v7 }
  0x1c   : > { %526 = vmatprep.subr.bf16.mxu0 %v568_v8  ;;  %544 = vmatprep.subr.bf16.mxu1 %v568_v8 }
  0x1f   : > { %527 = vmatpush3.bf16.msra.mxu0 %v568_v8  ;;  %552 = vmatpush3.bf16.msra.mxu1 %v568_v8 }
  0x20   : > { %528 = vmatprep.subr.bf16.mxu0 %v569_v9  ;;  %545 = vmatprep.subr.bf16.mxu1 %v569_v9 }
  0x23   : > { %529 = vmatpush3.bf16.msra.mxu0 %v569_v9  ;;  %553 = vmatpush3.bf16.msra.mxu1 %v569_v9 }
  0x26   : > { %531 = vmatmul.mubr.bf16.vlgmr.msra.gmra.mrb[0].mxu0 %v572_v10  ;;  %535 = vmatmul.mubr.bf16.vlgmr.msra.gmra.mrb[0].mxu1 %v573_v11 }
  0xf9   : > { %v532_v12 = vpop.f32.mrb[0].mxu0  ;;  %v536_v14 = vpop.f32.mrb[0].mxu1 }
  0xfa   : > { %v312_v15 = vpop.f32.mrb[1].mxu0  ;;  %v328_v16 = vpop.f32.mrb[1].mxu1  ;;  %v321_v19 = vadd.f32 %v532_v12, %v448_v13  ;;  %v337_v20 = vadd.f32 %v536_v14, %v448_v13 }
  0xfb   : > { %v533_v17 = vpop.f32.mrb[2].mxu0  ;;  %v537_v18 = vpop.f32.mrb[2].mxu1  ;;  %v313_v25 = vadd.f32 %v448_v13, %v312_v15  ;;  %v329_v26 = vadd.f32 %v448_v13, %v328_v16 }
  0xfc   : > { %v324_v21 = vadd.f32 %v533_v17, %v448_v13  ;;  %v340_v22 = vadd.f32 %v537_v18, %v448_v13  ;;  %v315_v23 = vpop.f32.mrb[3].mxu0  ;;  %v331_v24 = vpop.f32.mrb[3].mxu1 }
  0xfd   : > { %v316_v27 = vadd.f32 %v448_v13, %v315_v23  ;;  %v332_v28 = vadd.f32 %v448_v13, %v331_v24 }
  0xfe   : > { %v487_v29 = vpack.c.bf16 %v324_v21, %v321_v19  ;;  %v497_v30 = vpack.c.bf16 %v340_v22, %v337_v20 }
  0xff   : > { %v482_v31 = vpack.c.bf16 %v316_v27, %v313_v25  ;;  %v492_v32 = vpack.c.bf16 %v332_v28, %v329_v26 }
 0x100   : > { %499 = vst [vmem:[%s172_s13 + $0x8] sm:$0xff] %v487_v29   ;;  %501 = vst [vmem:[%s172_s13 + $0x18] sm:$0xff] %v497_v30  }
 0x101   : > { %483 = vst [vmem:[%s172_s13] sm:$0xff] %v482_v31   ;;  %500 = vst [vmem:[%s172_s13 + $0x10] sm:$0xff] %v492_v32  }
 0x102 PF: > { %s13_s12 = sadd.s32 1, %s580_s12  }
 0x103   : > { %p10_p4 = scmp.ge.s32.totalorder %s13_s12, 4  }
 0x105   :  { %12 = sbr.rel (!%p10_p4) target bundleno = 1 (0x1), region = 62 }

// kernel: basic_block_forward.5
= control target key start
LH: loop header
LB: loop body
LE: loop exit
PB: predicated region body
PF: predicated region fallthrough
CT: control target
= control target key end

     0   :  { %s650_s15 = smov 0   ;;  %s711_s0 = inlined_call_operand.vmem [shape: bf16[128,128], index: 0, kind: input, shape index: {}]   ;;  %s712_s1 = inlined_call_operand.vmem [shape: bf16[128,128], index: 1, kind: input, shape index: {}]   ;;  %s713_s2 = inlined_call_operand.vmem [shape: f32[1,128], index: 2, kind: input, shape index: {}]   ;;  %s714_s3 = inlined_call_operand.vmem [shape: bf16[128,128], index: 3, kind: input, shape index: {}]   ;;  %s715_s4 = inlined_call_operand.vmem [shape: f32[128,128], index: 4, kind: output, shape index: {}]  }
   0x1 LB: > { %s500_s16 = sadd.s32 4294967295, %s623_s15   ;;  %p504_p0 = scmp.ge.s32.totalorder %s623_s15, 1  ;;  %s623_s15 = sphi %s650_s15, %s14_s15  }
   0x2   : > { %p174_p1 = scmp.lt.s32.totalorder %s623_s15, 3 }
   0x4   : > { %p175_p2 = pnand %p504_p0, %p174_p1 }
   0x5   : > { %v605_v0 = vld [vmem:[%s712_s1] sm:$0xff] (!%p175_p2)   ;;  %s505_s19 = sshll.u32 (!%p175_p2), %s500_s16, 3  ;;  %v606_v1 = vld [vmem:[%s712_s1 + $0x8] sm:$0xff] (!%p175_p2)   ;;  %v607_v2 = vld [vmem:[%s712_s1 + $0x10] sm:$0xff] (!%p175_p2)  }
   0x6   : > { %178 = sbr.rel (%p175_p2) target bundleno = 260 (0x104), region = 36  ;;  %p206_p3 = scmp.lt.s32.totalorder (!%p175_p2), %s505_s19, 15  ;;  %557 = vmatprep.subr.bf16.mxu0 (!%p175_p2), %v605_v0  ;;  %581 = vmatprep.subr.bf16.mxu1 (!%p175_p2), %v605_v0  ;;  %v608_v3 = vld [vmem:[%s712_s1 + $0x18] sm:$0xff] (!%p175_p2)   ;;  %v609_v6 = vld [vmem:[%s712_s1 + $0x20] sm:$0xff] (!%p175_p2)   ;;  %v610_v7 = vld [vmem:[%s712_s1 + $0x28] sm:$0xff] (!%p175_p2)  }
   0x7   : > { %558 = vmatpush3.bf16.msra.mxu0 (!%p175_p2), %v605_v0  ;;  %589 = vmatpush3.bf16.msra.mxu1 (!%p175_p2), %v605_v0  ;;  %v611_v8 = vld [vmem:[%s712_s1 + $0x30] sm:$0xff] (!%p175_p2)   ;;  %v612_v9 = vld [vmem:[%s712_s1 + $0x38] sm:$0xff] (!%p175_p2)   ;;  %v511_v16 = vld [vmem:[%s713_s2] ss:$0 sm:$0xff] (!%p175_p2) }
   0x8   : > { %559 = vmatprep.subr.bf16.mxu0 (!%p175_p2), %v606_v1  ;;  %582 = vmatprep.subr.bf16.mxu1 (!%p175_p2), %v606_v1 }
   0xb   : > { %560 = vmatpush3.bf16.msra.mxu0 (!%p175_p2), %v606_v1  ;;  %590 = vmatpush3.bf16.msra.mxu1 (!%p175_p2), %v606_v1 }
   0xc   : > { %561 = vmatprep.subr.bf16.mxu0 (!%p175_p2), %v607_v2  ;;  %583 = vmatprep.subr.bf16.mxu1 (!%p175_p2), %v607_v2 }
   0xd   : > { %s717_s19 = smov (!%p206_p3, %s505_s19), 15 }
   0xe   : > { %s506_s24 = sshll.u32 %s717_s19, 2  ;;  %s510_s18 = sshll.u32 %s717_s19, 3 }
   0xf   : > { %s675_s27 = scalar_lea.vmem %s711_s0, %s506_s24  ;;  %562 = vmatpush3.bf16.msra.mxu0 %v607_v2  ;;  %591 = vmatpush3.bf16.msra.mxu1 %v607_v2  ;;  %s215_s14 = scalar_lea.vmem %s714_s3, %s506_s24 }
  0x10   : > { %v613_v4 = vld [vmem:[%s675_s27] sm:$0xff]   ;;  %v614_v5 = vld [vmem:[%s675_s27 + $0x10] sm:$0xff]   ;;  %563 = vmatprep.subr.bf16.mxu0 %v608_v3  ;;  %584 = vmatprep.subr.bf16.mxu1 %v608_v3  ;;  %v615_v10 = vld [vmem:[%s675_s27 + $0x8] sm:$0xff]   ;;  %s221_s21 = scalar_lea.vmem %s715_s4, %s510_s18 }
  0x11   : > { %573 = vmatprep.mubr.bf16.mxu0 %v613_v4  ;;  %577 = vmatprep.mubr.bf16.mxu1 %v614_v5  ;;  %v616_v11 = vld [vmem:[%s675_s27 + $0x18] sm:$0xff]   ;;  %v542_v12 = vld [vmem:[%s215_s14 + $0x8] sm:$0xff]   ;;  %v527_v14 = vld [vmem:[%s215_s14] sm:$0xff]  }
  0x12   : > { %v544_v13 = vld [vmem:[%s215_s14 + $0x18] sm:$0xff]   ;;  %v543_v15 = vld [vmem:[%s215_s14 + $0x10] sm:$0xff]   ;;  %v532_v17 = vunpack.c.l.bf16 %v542_v12  ;;  %v528_v21 = vunpack.c.l.bf16 %v527_v14  ;;  %v533_v27 = vunpack.c.h.bf16 %v542_v12  ;;  %v529_v33 = vunpack.c.h.bf16 %v527_v14 }
  0x13   : > { %564 = vmatpush3.bf16.msra.mxu0 %v608_v3  ;;  %592 = vmatpush3.bf16.msra.mxu1 %v608_v3  ;;  %v540_v18 = vunpack.c.l.bf16 %v544_v13  ;;  %v536_v22 = vunpack.c.l.bf16 %v543_v15  ;;  %v541_v28 = vunpack.c.h.bf16 %v544_v13  ;;  %v537_v34 = vunpack.c.h.bf16 %v543_v15 }
  0x14   : > { %565 = vmatprep.subr.bf16.mxu0 %v609_v6  ;;  %585 = vmatprep.subr.bf16.mxu1 %v609_v6 }
  0x17   : > { %566 = vmatpush3.bf16.msra.mxu0 %v609_v6  ;;  %593 = vmatpush3.bf16.msra.mxu1 %v609_v6 }
  0x18   : > { %567 = vmatprep.subr.bf16.mxu0 %v610_v7  ;;  %586 = vmatprep.subr.bf16.mxu1 %v610_v7 }
  0x1b   : > { %568 = vmatpush3.bf16.msra.mxu0 %v610_v7  ;;  %594 = vmatpush3.bf16.msra.mxu1 %v610_v7 }
  0x1c   : > { %569 = vmatprep.subr.bf16.mxu0 %v611_v8  ;;  %587 = vmatprep.subr.bf16.mxu1 %v611_v8 }
  0x1f   : > { %570 = vmatpush3.bf16.msra.mxu0 %v611_v8  ;;  %595 = vmatpush3.bf16.msra.mxu1 %v611_v8 }
  0x20   : > { %571 = vmatprep.subr.bf16.mxu0 %v612_v9  ;;  %588 = vmatprep.subr.bf16.mxu1 %v612_v9 }
  0x23   : > { %572 = vmatpush3.bf16.msra.mxu0 %v612_v9  ;;  %596 = vmatpush3.bf16.msra.mxu1 %v612_v9 }
  0x26   : > { %574 = vmatmul.mubr.bf16.vlgmr.msra.gmra.mrb[0].mxu0 %v615_v10  ;;  %578 = vmatmul.mubr.bf16.vlgmr.msra.gmra.mrb[0].mxu1 %v616_v11 }
  0xf9   : > { %v575_v19 = vpop.f32.mrb[0].mxu0  ;;  %v579_v20 = vpop.f32.mrb[0].mxu1 }
  0xfa   : > { %v370_v23 = vadd.f32 %v575_v19, %v511_v16  ;;  %v386_v24 = vadd.f32 %v579_v20, %v511_v16  ;;  %v361_v25 = vpop.f32.mrb[1].mxu0  ;;  %v377_v26 = vpop.f32.mrb[1].mxu1 }
  0xfb   : > { %v362_v29 = vadd.f32 %v511_v16, %v361_v25  ;;  %v378_v30 = vadd.f32 %v511_v16, %v377_v26  ;;  %v576_v31 = vpop.f32.mrb[2].mxu0  ;;  %v580_v32 = vpop.f32.mrb[2].mxu1 }
  0xfc   : > { %v410_v35 = vadd.f32 %v532_v17, %v370_v23  ;;  %v414_v36 = vadd.f32 %v540_v18, %v386_v24  ;;  %v373_v37 = vadd.f32 %v576_v31, %v511_v16  ;;  %v389_v38 = vadd.f32 %v580_v32, %v511_v16  ;;  %v364_v39 = vpop.f32.mrb[3].mxu0  ;;  %v380_v40 = vpop.f32.mrb[3].mxu1 }
  0xfd   : > { %v408_v41 = vadd.f32 %v528_v21, %v362_v29  ;;  %v412_v42 = vadd.f32 %v536_v22, %v378_v30  ;;  %v365_v43 = vadd.f32 %v511_v16, %v364_v39  ;;  %v381_v44 = vadd.f32 %v511_v16, %v380_v40 }
  0xfe   : > { %v418_v45 = vmax.f32 %v410_v35, 0.0  ;;  %v422_v46 = vmax.f32 %v414_v36, 0.0  ;;  %v411_v47 = vadd.f32 %v533_v27, %v373_v37  ;;  %v415_v48 = vadd.f32 %v541_v28, %v389_v38 }
  0xff   : > { %v416_v49 = vmax.f32 %v408_v41, 0.0  ;;  %v420_v50 = vmax.f32 %v412_v42, 0.0  ;;  %v409_v51 = vadd.f32 %v529_v33, %v365_v43  ;;  %v413_v52 = vadd.f32 %v537_v34, %v381_v44 }
 0x100   : > { %426 = vst [vmem:[%s221_s21 + $0x10] sm:$0xff] %v418_v45  ;;  %430 = vst [vmem:[%s221_s21 + $0x30] sm:$0xff] %v422_v46  ;;  %v419_v53 = vmax.f32 %v411_v47, 0.0  ;;  %v423_v54 = vmax.f32 %v415_v48, 0.0 }
 0x101   : > { %424 = vst [vmem:[%s221_s21] sm:$0xff] %v416_v49  ;;  %428 = vst [vmem:[%s221_s21 + $0x20] sm:$0xff] %v420_v50  ;;  %v417_v55 = vmax.f32 %v409_v51, 0.0  ;;  %v421_v56 = vmax.f32 %v413_v52, 0.0 }
 0x102   : > { %427 = vst [vmem:[%s221_s21 + $0x18] sm:$0xff] %v419_v53  ;;  %431 = vst [vmem:[%s221_s21 + $0x38] sm:$0xff] %v423_v54 }
 0x103   : > { %425 = vst [vmem:[%s221_s21 + $0x8] sm:$0xff] %v417_v55  ;;  %429 = vst [vmem:[%s221_s21 + $0x28] sm:$0xff] %v421_v56 }
 0x104 PF: > { %s14_s15 = sadd.s32 1, %s623_s15  }
 0x105   : > { %p11_p4 = scmp.ge.s32.totalorder %s14_s15, 4  }
 0x107   :  { %13 = sbr.rel (!%p11_p4) target bundleno = 1 (0x1), region = 69 }

</bundles_post_ra>
